<compile_context>
chip_gen: v7x
topology: tpu7x:2x2x1
jax: 0.10.0
libtpu: 0.0.40
codegen_flags: <defaults>
</compile_context>

<pallas_src>
import functools
import math

import jax
import jax.numpy as jnp
from jax.experimental import pallas as pl
from jax.experimental.pallas import tpu as pltpu


# --------------------------------------------------------------------------
# Kernel
# --------------------------------------------------------------------------
def _sdpa_kernel(q_ref, k_ref, v_ref, mask_ref, out_ref, attn_ref, *,
                 scale, mm_dtype, approx_recip):
    # q_ref: (TQ, D)   k_ref / v_ref: (S, D)   mask_ref: (TQ, S) bool
    q = q_ref[...]
    k = k_ref[...]
    v = v_ref[...]

    # Fold the 1/sqrt(d_k) scale into q (TQ*D multiplies, not TQ*S).
    q_scaled = (q * jnp.asarray(scale, dtype=q.dtype)).astype(mm_dtype)

    # scores = (q / sqrt(d_k)) @ k^T as a transposed contraction; f32 acc.
    scores = jax.lax.dot_general(
        q_scaled, k.astype(mm_dtype),
        dimension_numbers=(((1,), (1,)), ((), ())),
        preferred_element_type=jnp.float32,
    )

    # masked_fill_(attn_mask, -1e9)
    scores = jnp.where(mask_ref[...], jnp.float32(-1.0e9), scores)

    # Numerically stable softmax along the key axis.
    m = jnp.max(scores, axis=-1, keepdims=True)
    e = jnp.exp(scores - m)
    denom = jnp.sum(e, axis=-1, keepdims=True)
    # reciprocal (EUP slot) + multiply instead of a (TQ, S) divide on the VALU.
    attn_w = e * pl.reciprocal(denom, approx=approx_recip)

    # output = attn_weights @ v   (matmul dtype operands, f32 accumulation)
    out = jax.lax.dot_general(
        attn_w.astype(mm_dtype), v.astype(mm_dtype),
        dimension_numbers=(((1,), (0,)), ((), ())),
        preferred_element_type=jnp.float32,
    )

    out_ref[...] = out.astype(out_ref.dtype)
    attn_ref[...] = attn_w.astype(attn_ref.dtype)


# --------------------------------------------------------------------------
# Tiling / VMEM sizing helpers
# --------------------------------------------------------------------------
def _vmem_capacity_bytes():
    """Per-core VMEM capacity; conservative 64 MiB (v7x) fallback."""
    try:
        info = pltpu.get_tpu_info()
        for name in ("vmem_capacity_bytes", "vmem_size_bytes", "vmem_bytes"):
            cap = getattr(info, name, None)
            if cap:
                return int(cap)
    except Exception:
        pass
    return 64 * 1024 * 1024


def _working_set_bytes(tq, S, D, in_bytes, attn_bytes):
    """Approximate per-step VMEM working set (double-buffered streams)."""
    kv_resident = 2 * 2 * S * D * in_bytes          # K and V, double-buffered
    streamed = 2 * (tq * D * in_bytes               # q tile
                    + tq * D * in_bytes             # out tile
                    + tq * S * attn_bytes           # attn-weights tile
                    + tq * S * 1)                   # bool mask tile
    temps = 3 * tq * S * 4                          # f32 scores / exp temporaries
    return kv_resident + streamed + temps


def _choose_tq(S, D, in_bytes, attn_bytes, budget):
    """Largest q-tile dividing S whose working set fits ~60% of VMEM.

    Big tiles amortize the ~0.35us/grid-step overhead (prefer 512 on the
    128-MiB chips); the 60% headroom caps v7x (64 MiB) around TQ=256.
    """
    candidates = [c for c in (512, 256, 128, 64, 32, 16, 8)
                  if c <= S and S % c == 0]
    for tq in candidates:
        if _working_set_bytes(tq, S, D, in_bytes, attn_bytes) <= 0.6 * budget:
            return tq
    return candidates[-1] if candidates else S


# --------------------------------------------------------------------------
# Wrapper
# --------------------------------------------------------------------------
def scaled_dot_product_attention(q, k, v, attn_mask, *, d_k=None, tq=None,
                                 matmul_dtype=None):
    """Pallas equivalent of ScaledDotProductAttention.forward.

    q, k, v   : [B, H, S, D]
    attn_mask : bool, broadcastable to [B, H, S, S] (True = fill with -1e9)
    returns (output [B, H, S, D], attn_weights [B, H, S, S]) in the input dtype.
    """
    B, H, S, D = q.shape
    BH = B * H
    in_dtype = q.dtype
    if d_k is None:
        d_k = D
    mm_dtype = jnp.dtype(in_dtype if matmul_dtype is None else matmul_dtype)
    attn_dtype = in_dtype

    # Normalize mask to bool without an extra pass when it's already bool.
    if attn_mask.dtype != jnp.bool_:
        attn_mask = attn_mask != 0
    assert attn_mask.shape[-2:] == (S, S), "mask last two dims must be (S, S)"
    mask_shared = all(d == 1 for d in attn_mask.shape[:-2])

    budget = _vmem_capacity_bytes()
    in_bytes = jnp.dtype(in_dtype).itemsize
    attn_bytes = jnp.dtype(attn_dtype).itemsize
    if tq is None:
        tq = _choose_tq(S, D, in_bytes, attn_bytes, budget)
    assert S % tq == 0, f"query tile {tq} must divide sequence length {S}"
    nq = S // tq

    qf = q.reshape(BH, S, D)
    kf = k.reshape(BH, S, D)
    vf = v.reshape(BH, S, D)

    # q / out / attn stream per q-tile; K/V block index ignores the q-tile
    # grid axis so they stay resident in VMEM across the inner sweep.
    q_spec = pl.BlockSpec((pl.Squeezed(), tq, D), lambda bh, qi: (bh, qi, 0))
    kv_spec = pl.BlockSpec((pl.Squeezed(), S, D), lambda bh, qi: (bh, 0, 0))
    out_spec = pl.BlockSpec((pl.Squeezed(), tq, D), lambda bh, qi: (bh, qi, 0))
    attn_spec = pl.BlockSpec((pl.Squeezed(), tq, S), lambda bh, qi: (bh, qi, 0))

    if mask_shared:
        # Broadcast (causal/padding) mask: keep it [S, S] in HBM -- no
        # B*H*S*S materialization; index_map ignores the bh axis.
        maskf = attn_mask.reshape(S, S)
        mask_spec = pl.BlockSpec((tq, S), lambda bh, qi: (qi, 0))
    else:
        maskf = jnp.broadcast_to(attn_mask, (B, H, S, S)).reshape(BH, S, S)
        mask_spec = pl.BlockSpec((pl.Squeezed(), tq, S),
                                 lambda bh, qi: (bh, qi, 0))

    # Scoped-VMEM budget sized from the actual working set, capped at capacity.
    ws = _working_set_bytes(tq, S, D, in_bytes, attn_bytes)
    vmem_limit = int(min(max(int(ws * 1.3) + (16 << 20), 32 << 20), budget))

    kernel = functools.partial(
        _sdpa_kernel,
        scale=1.0 / math.sqrt(d_k),
        mm_dtype=mm_dtype,
        # approx reciprocal rides the EUP slot; enable on the low-precision path.
        approx_recip=(mm_dtype != jnp.dtype(jnp.float32)),
    )

    out, attn = pl.pallas_call(
        kernel,
        out_shape=(
            jax.ShapeDtypeStruct((BH, S, D), in_dtype),
            jax.ShapeDtypeStruct((BH, S, S), attn_dtype),
        ),
        grid_spec=pl.GridSpec(
            grid=(BH, nq),  # q-tile axis innermost so K/V stay resident
            in_specs=[q_spec, kv_spec, kv_spec, mask_spec],
            out_specs=[out_spec, attn_spec],
        ),
        compiler_params=pltpu.CompilerParams(
            # Shard only the bh axis across megacore TCs so each core keeps
            # its own heads' K/V resident (no duplicate K/V DMA on v7x).
            dimension_semantics=("parallel", "arbitrary"),
            vmem_limit_bytes=vmem_limit,
        ),
    )(qf, kf, vf, maskf)

    return out.reshape(B, H, S, D), attn.reshape(B, H, S, S)


# --------------------------------------------------------------------------
# Reference + tests
# --------------------------------------------------------------------------
def _reference(q, k, v, attn_mask):
    d_k = q.shape[-1]
    scores = jnp.einsum("bhqd,bhkd->bhqk", q, k) / jnp.sqrt(jnp.float32(d_k))
    scores = jnp.where(attn_mask, -1.0e9, scores)
    w = jax.nn.softmax(scores, axis=-1)
    out = jnp.einsum("bhqk,bhkd->bhqd", w, v)
    return out, w


def _run_case(key, B, H, S, D, dtype=jnp.float32, shared_mask=True, tq=None,
              atol=1e-5, rtol=1e-5):
    kq, kk, kv = jax.random.split(key, 3)
    q = jax.random.normal(kq, (B, H, S, D), dtype=jnp.float32).astype(dtype)
    k = jax.random.normal(kk, (B, H, S, D), dtype=jnp.float32).astype(dtype)
    v = jax.random.normal(kv, (B, H, S, D), dtype=jnp.float32).astype(dtype)

    # causal attention mask (True = masked)
    causal = jnp.triu(jnp.ones((S, S), dtype=jnp.bool_), k=1)
    if shared_mask:
        attn_mask = causal[None, None]                       # (1, 1, S, S)
    else:
        attn_mask = jnp.broadcast_to(causal, (B, H, S, S))   # per-(b, h)

    out, attn_w = scaled_dot_product_attention(q, k, v, attn_mask, tq=tq)
    out = jax.block_until_ready(out)
    attn_w = jax.block_until_ready(attn_w)

    assert out.shape == (B, H, S, D) and attn_w.shape == (B, H, S, S)
    assert out.dtype == dtype and attn_w.dtype == dtype

    ref_out, ref_w = _reference(q.astype(jnp.float32), k.astype(jnp.float32),
                                v.astype(jnp.float32), attn_mask)
    assert jnp.allclose(out.astype(jnp.float32), ref_out, atol=atol, rtol=rtol)
    assert jnp.allclose(attn_w.astype(jnp.float32), ref_w, atol=atol, rtol=rtol)


if __name__ == "__main__":
    key = jax.random.PRNGKey(0)
    k1, k2, k3, k4 = jax.random.split(key, 4)

    # Small shapes consistent with the module; shared-mask path, single q-tile.
    _run_case(k1, B=2, H=2, S=8, D=32, shared_mask=True)

    # Streamed full [B,H,S,S] mask path.
    _run_case(k2, B=2, H=2, S=8, D=32, shared_mask=False)

    # Larger case: tiled q, resident K/V, shared [S,S] mask.
    _run_case(k3, B=1, H=2, S=256, D=64, shared_mask=True, tq=128)

    # bf16 path: bf16 MXU operands, bf16 attn writeback, approx reciprocal.
    _run_case(k4, B=1, H=2, S=128, D=64, dtype=jnp.bfloat16, shared_mask=True,
              atol=3e-2, rtol=3e-2)

    print("KERNEL_OK")
</pallas_src>

<mosaic_0001>
module attributes {stable_mosaic.version = 11 : i64} {
  func.func @_sdpa_kernel(%arg0: i32, %arg1: i32, %arg2: memref<1x8x32xf32, #tpu.memory_space<vmem>>, %arg3: memref<1x8x32xf32, #tpu.memory_space<vmem>>, %arg4: memref<1x8x32xf32, #tpu.memory_space<vmem>>, %arg5: memref<8x8xi32, #tpu.memory_space<vmem>>, %arg6: memref<1x8x32xf32, #tpu.memory_space<vmem>>, %arg7: memref<1x8x8xf32, #tpu.memory_space<vmem>>) attributes {dimension_semantics = [#tpu.dimension_semantics<parallel>, #tpu.dimension_semantics<arbitrary>], iteration_bounds = array<i64: 4, 1>, scalar_prefetch = 0 : i64, scratch_operands = 0 : i64, tpu.core_type = #tpu.core_type<tc>, window_params = [{transform_indices = @transform_0, window_bounds = array<i64: 1, 8, 32>}, {transform_indices = @transform_1, window_bounds = array<i64: 1, 8, 32>}, {transform_indices = @transform_2, window_bounds = array<i64: 1, 8, 32>}, {transform_indices = @transform_3, window_bounds = array<i64: 8, 8>}, {transform_indices = @transform_4, window_bounds = array<i64: 1, 8, 32>}, {transform_indices = @transform_5, window_bounds = array<i64: 1, 8, 8>}]} {
    %c0 = arith.constant 0 : index
    %c0_0 = arith.constant 0 : index
    %c0_1 = arith.constant 0 : index
    %0 = vector.load %arg2[%c0, %c0_0, %c0_1] : memref<1x8x32xf32, #tpu.memory_space<vmem>>, vector<1x8x32xf32>
    %1 = vector.shape_cast %0 : vector<1x8x32xf32> to vector<8x32xf32>
    %c0_2 = arith.constant 0 : index
    %c0_3 = arith.constant 0 : index
    %c0_4 = arith.constant 0 : index
    %2 = vector.load %arg3[%c0_2, %c0_3, %c0_4] : memref<1x8x32xf32, #tpu.memory_space<vmem>>, vector<1x8x32xf32>
    %3 = vector.shape_cast %2 : vector<1x8x32xf32> to vector<8x32xf32>
    %c0_5 = arith.constant 0 : index
    %c0_6 = arith.constant 0 : index
    %c0_7 = arith.constant 0 : index
    %4 = vector.load %arg4[%c0_5, %c0_6, %c0_7] : memref<1x8x32xf32, #tpu.memory_space<vmem>>, vector<1x8x32xf32>
    %5 = vector.shape_cast %4 : vector<1x8x32xf32> to vector<8x32xf32>
    %cst = arith.constant 0.176776692 : f32
    %6 = vector.broadcast %cst : f32 to vector<8x32xf32>
    %7 = arith.mulf %1, %6 : vector<8x32xf32>
    %cst_8 = arith.constant dense<0.000000e+00> : vector<8x8xf32>
    %8 = tpu.matmul %7, %3, %cst_8 {dimension_numbers = #tpu.dot_dimension_numbers<[1], [1], [0], [0], [0, 0, 1, 0], [], []>} : vector<8x32xf32>, vector<8x32xf32>, vector<8x8xf32> -> vector<8x8xf32>
    %c0_9 = arith.constant 0 : index
    %c0_10 = arith.constant 0 : index
    %9 = vector.load %arg5[%c0_9, %c0_10] : memref<8x8xi32, #tpu.memory_space<vmem>>, vector<8x8xi32>
    %cst_11 = arith.constant dense<0> : vector<8x8xi32>
    %10 = arith.cmpi ne, %9, %cst_11 : vector<8x8xi32>
    %cst_12 = arith.constant -1.000000e+09 : f32
    %11 = vector.broadcast %cst_12 : f32 to vector<8x8xf32>
    %12 = arith.select %10, %11, %8 : vector<8x8xi1>, vector<8x8xf32>
    %cst_13 = arith.constant dense<0xFF800000> : vector<8xf32>
    %13 = vector.multi_reduction <maximumf>, %12, %cst_13 [1] : vector<8x8xf32> to vector<8xf32>
    %14 = vector.shape_cast %13 : vector<8xf32> to vector<8x1xf32>
    %15 = vector.broadcast %14 : vector<8x1xf32> to vector<8x8xf32>
    %16 = arith.subf %12, %15 : vector<8x8xf32>
    %17 = math.exp %16 : vector<8x8xf32>
    %cst_14 = arith.constant dense<0.000000e+00> : vector<8xf32>
    %18 = vector.multi_reduction <add>, %17, %cst_14 [1] : vector<8x8xf32> to vector<8xf32>
    %19 = vector.shape_cast %18 : vector<8xf32> to vector<8x1xf32>
    %20 = tpu.reciprocal %19 : vector<8x1xf32> -> vector<8x1xf32>
    %21 = vector.broadcast %20 : vector<8x1xf32> to vector<8x8xf32>
    %22 = arith.mulf %17, %21 : vector<8x8xf32>
    %cst_15 = arith.constant dense<0.000000e+00> : vector<8x32xf32>
    %23 = tpu.matmul %22, %5, %cst_15 {dimension_numbers = #tpu.dot_dimension_numbers<[1], [0], [0], [1], [0, 0, 1, 1], [], []>} : vector<8x8xf32>, vector<8x32xf32>, vector<8x32xf32> -> vector<8x32xf32>
    %c0_16 = arith.constant 0 : index
    %c0_17 = arith.constant 0 : index
    %c0_18 = arith.constant 0 : index
    %24 = vector.load %arg6[%c0_16, %c0_17, %c0_18] : memref<1x8x32xf32, #tpu.memory_space<vmem>>, vector<1x8x32xf32>
    %25 = vector.shape_cast %24 : vector<1x8x32xf32> to vector<8x32xf32>
    %26 = vector.shape_cast %23 : vector<8x32xf32> to vector<1x8x32xf32>
    tpu.vector_store %arg6[%c0_16, %c0_17, %c0_18], %26 {strides = array<i32>} : memref<1x8x32xf32, #tpu.memory_space<vmem>>, vector<1x8x32xf32>,
    %c0_19 = arith.constant 0 : index
    %c0_20 = arith.constant 0 : index
    %c0_21 = arith.constant 0 : index
    %27 = vector.load %arg7[%c0_19, %c0_20, %c0_21] : memref<1x8x8xf32, #tpu.memory_space<vmem>>, vector<1x8x8xf32>
    %28 = vector.shape_cast %27 : vector<1x8x8xf32> to vector<8x8xf32>
    %29 = vector.shape_cast %22 : vector<8x8xf32> to vector<1x8x8xf32>
    tpu.vector_store %arg7[%c0_19, %c0_20, %c0_21], %29 {strides = array<i32>} : memref<1x8x8xf32, #tpu.memory_space<vmem>>, vector<1x8x8xf32>,
    return
  }
  func.func @transform_0(%arg0: i32, %arg1: i32) -> (i32, i32, i32) {
    %c0_i32 = arith.constant 0 : i32
    %c0_i32_0 = arith.constant 0 : i32
    return %arg0, %arg1, %c0_i32 : i32, i32, i32
  }
  func.func @transform_1(%arg0: i32, %arg1: i32) -> (i32, i32, i32) {
    %c0_i32 = arith.constant 0 : i32
    %c0_i32_0 = arith.constant 0 : i32
    %c0_i32_1 = arith.constant 0 : i32
    return %arg0, %c0_i32, %c0_i32_0 : i32, i32, i32
  }
  func.func @transform_2(%arg0: i32, %arg1: i32) -> (i32, i32, i32) {
    %c0_i32 = arith.constant 0 : i32
    %c0_i32_0 = arith.constant 0 : i32
    %c0_i32_1 = arith.constant 0 : i32
    return %arg0, %c0_i32, %c0_i32_0 : i32, i32, i32
  }
  func.func @transform_3(%arg0: i32, %arg1: i32) -> (i32, i32) {
    %c0_i32 = arith.constant 0 : i32
    %c0_i32_0 = arith.constant 0 : i32
    return %arg1, %c0_i32 : i32, i32
  }
  func.func @transform_4(%arg0: i32, %arg1: i32) -> (i32, i32, i32) {
    %c0_i32 = arith.constant 0 : i32
    %c0_i32_0 = arith.constant 0 : i32
    return %arg0, %arg1, %c0_i32 : i32, i32, i32
  }
  func.func @transform_5(%arg0: i32, %arg1: i32) -> (i32, i32, i32) {
    %c0_i32 = arith.constant 0 : i32
    %c0_i32_0 = arith.constant 0 : i32
    return %arg0, %arg1, %c0_i32 : i32, i32, i32
  }
}

</mosaic_0001>

<bundles_post_ra>
// kernel: tpu_custom_call.1
= control target key start
LH: loop header
LB: loop body
LE: loop exit
PB: predicated region body
PF: predicated region fallthrough
CT: control target
= control target key end

     0   :  { %s1404_s0 = inlined_call_operand.hbm [shape: f32[4,8,32], index: 0, kind: input, shape index: {}]   ;;  %s1405_s1 = inlined_call_operand.hbm [shape: f32[4,8,32], index: 1, kind: input, shape index: {}]   ;;  %s1406_s2 = inlined_call_operand.hbm [shape: f32[4,8,32], index: 2, kind: input, shape index: {}]   ;;  %s1407_s3 = inlined_call_operand.vmem [shape: s32[8,8], index: 3, kind: input, shape index: {}]   ;;  %s1408_s4 = inlined_call_operand.hbm [shape: f32[4,8,32], index: 4, kind: output, shape index: {0}]   ;;  %s1409_s5 = inlined_call_operand.hbm [shape: f32[4,8,8], index: 5, kind: output, shape index: {1}]  }
   0x1   :  { %1418 = sst [smem:[#allocation20_spill]] %s1405_s1 }
   0x2   :  { %11 = vsyncpa [#allocation3], 0 }
   0x3   :  { %13 = vsyncpa [#allocation3 + $0x1], 0 }
   0x4   :  { %14 = vsyncpa [#allocation6], 0 }
   0x5   :  { %16 = vsyncpa [#allocation6 + $0x1], 0 }
   0x6   :  { %17 = vsyncpa [#allocation4], 0 }
   0x7   :  { %19 = vsyncpa [#allocation4 + $0x1], 0 }
   0x8   :  { %20 = vsyncpa [#allocation10], 0 }
   0x9   :  { %22 = vsyncpa [#allocation10 + $0x1], 0  ;;  %s1104_s18 = smov 0   ;;  %s1106_s19 = smov 0  }
   0xa   :  { %s1108_s20 = smov 0   ;;  %s1110_s21 = smov 0  }
   0xb   :  { %s1112_s22 = smov 0   ;;  %s1114_s23 = smov 0  }
   0xc LB: > { %1419 = sst [smem:[#allocation15_spill]] %s1045_s18  ;;  %s1135_s24 = sadd.s32 4294967295, %s1065_s23   ;;  %s1065_s23 = sphi %s1114_s23, %s28_s23   ;;  %s1061_s22 = sphi %s1112_s22, %s1444_s22   ;;  %s1057_s21 = sphi %s1110_s21, %s1443_s21   ;;  %s1053_s20 = sphi %s1108_s20, %s1447_s20   ;;  %s1049_s19 = sphi %s1106_s19, %s1446_s19   ;;  %s1045_s18 = sphi %s1104_s18, %s1445_s18  }
   0xd   : > { %1420 = sst [smem:[#allocation16_spill]] %s1061_s22  ;;  %s735_s25 = sadd.s32 4294967294, %s1065_s23  }
   0xe   : > { %s40_s26 = sadd.s32 1, %s1061_s22  ;;  %s49_s27 = sadd.s32 1, %s1053_s20 }
   0xf   : > { %p42_p0 = scmp.ge.s32.totalorder %s40_s26, 4  ;;  %p56_p1 = scmp.ne.s32.totalorder %s1053_s20, %s1049_s19 }
  0x10   : > { %p57_p2 = scmp.eq.s32.totalorder %s1065_s23, 0  ;;  %p62_p3 = scmp.ne.s32.totalorder %s1049_s19, %s1045_s18 }
  0x11   : > { %s1449_s26 = smov (%p42_p0, %s40_s26), 0  ;;  %p63_p5 = scmp.eq.s32.totalorder %s1135_s24, 0 }
  0x12   : > { %1421 = sst [smem:[#allocation17_spill]] %s1449_s26  ;;  %p1147_p4 = por %p57_p2, %p56_p1 }
  0x13   : > { %s44_s29 = ssub.s32 %s1061_s22, %s1449_s26  ;;  %p166_p6 = scmp.eq.s32.totalorder %s1135_s24, 3 }
  0x14   : > { %p47_p7 = scmp.eq.s32.totalorder %s44_s29, 0  ;;  %p1155_p8 = por %p63_p5, %p62_p3 }
  0x15   : > { %p1159_p9 = por %p166_p6, %p56_p1  ;;  %p172_p10 = scmp.eq.s32.totalorder %s735_s25, 3 }
  0x16   : > { %s1423_s30 = scalar_select %p1155_p8, 1, 0 }
  0x17   : > { %s1424_s6 = scalar_select %p1159_p9, 1, 0 }
  0x18   : > { %s1164_s7 = scalar_select %p47_p7, %s1053_s20, %s49_s27  }
  0x19   : > { %p1166_p11 = por %p172_p10, %p62_p3  ;;  %p801_p12 = scmp.lt.s32.totalorder %s1065_s23, 4 }
  0x1a   : > { %1425 = sst [smem:[#allocation18_spill]] %s1164_s7  ;;  %s1410_s9 = sand.u32 1, %s1053_s20  }
  0x1b   : > { %s1426_s8 = scalar_select %p1166_p11, 1, 0 }
  0x1c   : > { %s1174_s10 = sshll.u32 %s1410_s9, 3  ;;  %s1177_s11 = sshll.u32 %s1061_s22, 7 }
  0x1d   : > { %1427 = sst [smem:[#allocation19_spill]] %s1426_s8  ;;  %p1181_p13 = pnand %p801_p12, %p1147_p4 }
  0x1e   : > { %s246_s13 = sand.u32 1, %s1065_s23   ;;  %s1429_s1 = sld [smem:[#allocation20_spill]] }
  0x1f   : > { %s1428_s12 = scalar_select %p1181_p13, 1, 0 }
  0x20   : > { %s250_s17 = scalar_lea.vmem [#allocation5], %s1174_s10  ;;  %s1197_s27 = scalar_lea.sflag [#allocation6], %s246_s13 }
  0x21   : > { %s257_s25 = sshll.u32 %s250_s17, 4  ;;  %p1203_p3 = pneg %p1181_p13  ;;  %s1194_s25 = int_to_ptr.vmem [resolvable:$true] %s257_s25 }
  0x24   : > { %s1190_s16 = scalar_lea.hbm %s1429_s1, %s1177_s11  ;;  %s862_s17 = scalar_lea.hbm %s1429_s1, 512 }
  0x25   : > { %s857_s28 = scalar_lea.hbm %s1190_s16, 128  ;;  %p863_p6 = scmp.lt.u32.totalorder %s1190_s16, %s1429_s1 }
  0x26   : > { %p858_p2 = scmp.ne.s32.totalorder %s1190_s16, %s857_s28  ;;  %p864_p7 = scmp.lt.u32.totalorder %s862_s17, %s857_s28 }
  0x27   : > { %p866_p12 = scmp.lt.u32.totalorder %s857_s28, %s1190_s16 }
  0x28   : > { %p860_p4 = pnand %p1203_p3, %p858_p2  ;;  %p865_p10 = por %p864_p7, %p863_p6 }
  0x2a   : > { %p861_p5 = pneg %p860_p4  ;;  %p867_p0 = por %p866_p12, %p865_p10 }
  0x2c   : > { %p868_p1 = pnand %p867_p0, %p861_p5 }
  0x2e   : > { %871 = shalt.err (!%p868_p1)
}
  0x2f   : > { %s872_s13 = scalar_lea.vmem %s1194_s25, 128  ;;  %s1067_s14 = smov [#allocation5]  }
  0x30   : > { %p873_p2 = scmp.ne.s32.totalorder %s1194_s25, %s872_s13  ;;  %s877_s15 = sshll.u32 %s1067_s14, 4  ;;  %s878_s15 = int_to_ptr.vmem [resolvable:$false] %s877_s15 }
  0x31   : > { %s879_s26 = scalar_lea.vmem %s878_s15, 256  ;;  %p880_p9 = scmp.lt.s32.totalorder %s1194_s25, %s878_s15 }
  0x32   : > { %p875_p4 = pnand %p873_p2, %p1203_p3  ;;  %p881_p8 = scmp.lt.s32.totalorder %s879_s26, %s872_s13 }
  0x34   : > { %p876_p11 = pneg %p875_p4  ;;  %p882_p6 = por %p881_p8, %p880_p9 }
  0x36   : > { %p883_p7 = pnand %p882_p6, %p876_p11 }
  0x38   : > { %886 = shalt.err (!%p883_p7)
}
  0x39   : > { %790 = dma.hbm_to_vmem [thread:$0]  (!%p1181_p13), %s1190_s16, 128, %s1194_s25, %s1197_s27  }
  0x3a   : > { %p1431_p0 = scmp.lt.s32.totalorder %s1065_s23, 5  ;;  %p1432_p1 = scmp.ge.s32.totalorder %s1065_s23, 1 }
  0x3b   : > { %s1239_s13 = scalar_lea.hbm %s1404_s0, %s1177_s11  ;;  %s231_s14 = scalar_lea.vmem [#allocation2], %s1174_s10 }
  0x3c   : > { %p1231_p5 = pnand %p1432_p1, %p1431_p0  ;;  %s239_s15 = sshll.u32 %s231_s14, 4  ;;  %s1242_s15 = int_to_ptr.vmem [resolvable:$true] %s239_s15 }
  0x3d   : > { %s1248_s26 = scalar_lea.hbm %s1406_s2, %s1177_s11  ;;  %s1434_s1 = sand.u32 1, %s1053_s20  }
  0x3e   : > { %s1433_s9 = scalar_select %p1231_p5, 1, 0 }
  0x3f   : > { %s228_s22 = scalar_lea.sflag [#allocation3], %s1434_s1  ;;  %s887_s7 = scalar_lea.hbm %s1239_s13, 128 }
  0x40   : > { %p888_p8 = scmp.ne.s32.totalorder %s1239_s13, %s887_s7  ;;  %s892_s8 = scalar_lea.hbm %s1404_s0, 512 }
  0x41   : > { %p893_p10 = scmp.lt.u32.totalorder %s1239_s13, %s1404_s0  ;;  %p894_p12 = scmp.lt.u32.totalorder %s892_s8, %s887_s7 }
  0x42   : > { %p890_p9 = pnand %p888_p8, %p1203_p3  ;;  %p896_p4 = scmp.lt.u32.totalorder %s887_s7, %s1239_s13 }
  0x43   : > { %p895_p2 = por %p894_p12, %p893_p10 }
  0x44   : > { %p891_p11 = pneg %p890_p9 }
  0x45   : > { %p897_p6 = por %p896_p4, %p895_p2 }
  0x47   : > { %p898_p7 = pnand %p897_p6, %p891_p11 }
  0x49   : > { %901 = shalt.err (!%p898_p7)
}
  0x4a   : > { %s902_s1 = scalar_lea.vmem %s1242_s15, 128  ;;  %s1068_s11 = smov [#allocation2]  }
  0x4b   : > { %p903_p0 = scmp.ne.s32.totalorder %s1242_s15, %s902_s1  ;;  %s907_s16 = sshll.u32 %s1068_s11, 4  ;;  %s908_s16 = int_to_ptr.vmem [resolvable:$false] %s907_s16 }
  0x4c   : > { %s909_s18 = scalar_lea.vmem %s908_s16, 256  ;;  %p910_p9 = scmp.lt.s32.totalorder %s1242_s15, %s908_s16 }
  0x4d   : > { %p905_p1 = pnand %p903_p0, %p1203_p3  ;;  %p911_p5 = scmp.lt.s32.totalorder %s909_s18, %s902_s1 }
  0x4f   : > { %p906_p8 = pneg %p905_p1  ;;  %p912_p10 = por %p911_p5, %p910_p9 }
  0x51   : > { %p913_p12 = pnand %p912_p10, %p906_p8 }
  0x53   : > { %916 = shalt.err (!%p913_p12)
}
  0x54   : > { %787 = dma.hbm_to_vmem [thread:$0]  (!%p1181_p13), %s1239_s13, 128, %s1242_s15, %s228_s22  }
  0x55   : > { %s268_s7 = scalar_lea.vmem [#allocation7], %s1174_s10  ;;  %s917_s25 = scalar_lea.hbm %s1248_s26, 128 }
  0x56   : > { %s275_s8 = sshll.u32 %s268_s7, 4  ;;  %p918_p11 = scmp.ne.s32.totalorder %s1248_s26, %s917_s25  ;;  %s276_s8 = int_to_ptr.vmem [resolvable:$true] %s275_s8 }
  0x57   : > { %s922_s14 = scalar_lea.hbm %s1406_s2, 512  ;;  %p923_p4 = scmp.lt.u32.totalorder %s1248_s26, %s1406_s2 }
  0x58   : > { %p920_p5 = pnand %p918_p11, %p1203_p3  ;;  %p924_p6 = scmp.lt.u32.totalorder %s922_s14, %s917_s25 }
  0x59   : > { %p926_p0 = scmp.lt.u32.totalorder %s917_s25, %s1248_s26 }
  0x5a   : > { %p921_p2 = pneg %p920_p5  ;;  %p925_p7 = por %p924_p6, %p923_p4 }
  0x5c   : > { %p927_p1 = por %p926_p0, %p925_p7 }
  0x5e   : > { %p928_p8 = pnand %p927_p1, %p921_p2 }
  0x60   : > { %931 = shalt.err (!%p928_p8)
}
  0x61   : > { %s932_s22 = scalar_lea.vmem %s276_s8, 128  ;;  %s1069_s10 = smov [#allocation7]  }
  0x62   : > { %p933_p9 = scmp.ne.s32.totalorder %s276_s8, %s932_s22  ;;  %s937_s13 = sshll.u32 %s1069_s10, 4  ;;  %s938_s13 = int_to_ptr.vmem [resolvable:$false] %s937_s13 }
  0x63   : > { %s939_s15 = scalar_lea.vmem %s938_s13, 256  ;;  %p940_p11 = scmp.lt.s32.totalorder %s276_s8, %s938_s13 }
  0x64   : > { %p935_p10 = pnand %p933_p9, %p1203_p3  ;;  %p941_p5 = scmp.lt.s32.totalorder %s939_s15, %s932_s22 }
  0x66   : > { %p936_p12 = pneg %p935_p10  ;;  %p942_p13 = por %p941_p5, %p940_p11 }
  0x68   : > { %p943_p4 = pnand %p942_p13, %p936_p12 }
  0x6a   : > { %946 = shalt.err (!%p943_p4)
}
  0x6b   : > { %p1435_p6 = scmp.ne.s32.totalorder %s1428_s12, 0  ;;  %p1436_p2 = scmp.ne.s32.totalorder %s1433_s9, 0 }
  0x6c   : > { %s1295_s29 = sand.u32 (!%p1436_p2), 1, %s1049_s19   ;;  %p1437_p13 = scmp.ne.s32.totalorder (!%p1436_p2), %s1423_s30, 0 }
  0x6d   : > { %793 = dma.hbm_to_vmem [thread:$0]  (!%p1435_p6), %s1248_s26, 128, %s276_s8, %s1197_s27  }
  0x6e   : > { %284 = sbr.rel (%p1436_p2) target bundleno = 880 (0x370), region = 36  ;;  %s1298_s16 = sshll.u32 (!%p1436_p2), %s1295_s29, 3 }
  0x6f   : > { %s287_s18 = scalar_lea.sflag (!%p1436_p2), [#allocation3], %s1295_s29  ;;  %s290_s7 = scalar_lea.vmem (!%p1436_p2), [#allocation2], %s1298_s16 }
  0x75   : > { %1028 = dma.done.wait (%p1437_p13), %s287_s18, 128  }
  0x76   : > { %1030 = vsyncadd (%p1437_p13), %s287_s18, 4294967168  ;;  %s295_s12 = sand.u32 1, %s1135_s24   ;;  %s299_s9 = scalar_lea.vmem [#allocation5], %s1298_s16 }
  0x77   : > { %s296_s27 = scalar_lea.sflag [#allocation6], %s295_s12 }
  0x78   : > { %1032 = dma.done.wait (%p1437_p13), %s296_s27, 256  }
  0x79   : > { %1034 = vsyncadd (%p1437_p13), %s296_s27, 4294967040  ;;  %v1070_v0 = vmov 0.0   ;;  %vm1071_vm0 = vmmov 0   ;;  %vm362_vm1 = vcmask 261120   ;;  %v359_v1 = vld [vmem:[%s299_s9] sm:$0xff]  ;;  %v358_v2 = vld [vmem:[%s290_s7] sm:$0xff] }
  0x7a   : > { %764 = vmatprep.subr.mxu0 %v1070_v0  ;;  %766 = vmatprep.mubr.msk.f32.mxu0 %vm1071_vm0, %v1070_v0  ;;  %v361_v3 = vmul.f32 0.17677669, %v358_v2  ;;  %v439_v4 = vld [vmem:[%s1407_s3] sm:$0xff]  ;;  %vm442_vm3 = vcmask 64512   ;;  %s308_s30 = scalar_lea.vmem [#allocation7], %s1298_s16  ;;  %s353_s8 = scalar_lea.vmem [#allocation9], %s1298_s16 }
  0x7b   : > { %769 = vmatprep.subr.mxu1 %v1070_v0  ;;  %771 = vmatprep.mubr.msk.f32.mxu1 %vm1071_vm0, %v1070_v0  ;;  %vm440_vm2 = vcmp.ne.s32.totalorder %v439_v4, 0  ;;  %v360_v14 = vld [vmem:[%s308_s30] sm:$0xff]  ;;  %s756_s25 = sshll.u32 %s1057_s21, 7  ;;  %s563_s1 = sshll.u32 %s353_s8, 4  ;;  %s564_s1 = int_to_ptr.vmem [resolvable:$true] %s563_s1 }
  0x7c   : > { %765 = vmatpush3.xpose.msk.msra.mxu0 %vm362_vm1, %v359_v1  ;;  %770 = vmatpush3.msra.mxu1 %v360_v14  ;;  %s1329_s14 = scalar_lea.hbm %s1409_s5, %s756_s25  ;;  %s535_s11 = scalar_lea.sflag [#allocation10], %s1295_s29 }
  0x7d   : > { %s947_s22 = scalar_lea.vmem %s564_s1, 128  ;;  %p1438_p7 = scmp.ne.s32.totalorder %s1424_s6, 0 }
  0x7e   : > { %p948_p3 = scmp.ne.s32.totalorder %s564_s1, %s947_s22  ;;  %s1072_s10 = smov [#allocation9]  }
  0x7f   : > { %767 = vmatmul.mubr.msk.f32.vlgmr.msra.gmra.mrb[0].mxu0 %vm362_vm1, %v361_v3  ;;  %s951_s13 = sshll.u32 %s1072_s10, 4  ;;  %s952_s13 = int_to_ptr.vmem [resolvable:$false] %s951_s13 }
  0x80   : > { %p949_p0 = pnand %p948_p3, %p1438_p7  ;;  %s953_s15 = scalar_lea.vmem %s952_s13, 256 }
  0x81   : > { %p954_p8 = scmp.lt.s32.totalorder %s564_s1, %s952_s13  ;;  %p955_p9 = scmp.lt.s32.totalorder %s953_s15, %s947_s22 }
  0x82   : > { %p950_p1 = pneg %p949_p0 }
  0x83   : > { %p956_p10 = por %p955_p9, %p954_p8 }
  0x85   : > { %p957_p12 = pnand %p956_p10, %p950_p1 }
 0x152   : > { %v435_v5 = vpop.f32.mrb[0].mxu0 }
 0x153   : > { %v441_v6 = vsel %vm440_vm2, -1e+09, %v435_v5  ;;  %v768_v7 = vpop.f32.mrb[1].mxu0 }
 0x154   : > { %v443_v8 = vsel %vm442_vm3, %v441_v6, -inf }
 0x155   : > { %444 = vmax.xlane.f32.xlu0 %v443_v8 }
 0x1e2   : > { %v445_v9 = vpop.xlane.xlu0 %444 }
 0x1e3   : > { %v446_v10 = vsub.f32 %v441_v6, %v445_v9 }
 0x1e5   : > { %v447_v11 = vmul.f32 1.442695, %v446_v10 }
 0x1e7   : > { %853 = vpow2.f32 %v447_v11 }
 0x1f1   : > { %v854_v12 = vpop.eup %853 }
 0x1f2   : > { %v449_v13 = vsel %vm442_vm3, %v854_v12, 0.0 }
 0x1f3   : > { %450 = vadd.xlane.f32.xlu0 %v449_v13 }
 0x280   : > { %v451_v15 = vpop.xlane.xlu0 %450 }
 0x281   : > { %855 = vrcp.f32 %v451_v15 }
 0x28b   : > { %v856_v16 = vpop.eup %855 }
 0x28c   : > { %v453_v17 = vmul.f32 %v856_v16, %v854_v12 }
 0x28e   : > { %772 = vmatmul.mubr.msk.f32.vlgmr.msra.gmra.mrb[0].mxu1 %vm442_vm3, %v453_v17  ;;  %528 = vst.msk [vmem:[%s353_s8] sm:$0xff] %vm442_vm3, %v453_v17 }
 0x28f   : > { %960 = shalt.err (!%p957_p12)
}
 0x290   : > { %s961_s18 = scalar_lea.hbm %s1329_s14, 128  ;;  %s965_s27 = scalar_lea.hbm %s1409_s5, 512 }
 0x291   : > { %p962_p11 = scmp.ne.s32.totalorder %s1329_s14, %s961_s18  ;;  %p966_p6 = scmp.lt.u32.totalorder %s1329_s14, %s1409_s5 }
 0x292   : > { %p967_p2 = scmp.lt.u32.totalorder %s965_s27, %s961_s18  ;;  %p969_p3 = scmp.lt.u32.totalorder %s961_s18, %s1329_s14 }
 0x293   : > { %p963_p5 = pnand %p962_p11, %p1438_p7 }
 0x294   : > { %p968_p13 = por %p967_p2, %p966_p6 }
 0x295   : > { %p964_p4 = pneg %p963_p5 }
 0x296   : > { %p970_p0 = por %p969_p3, %p968_p13 }
 0x298   : > { %p971_p1 = pnand %p970_p0, %p964_p4 }
 0x29a   : > { %974 = shalt.err (!%p971_p1)
}
 0x29b   : > { %781 = dma.vmem_to_hbm [thread:$0]  (%p1438_p7), %s564_s1, 128, %s1329_s14, %s535_s11  }
 0x29c   : > { %s346_s26 = scalar_lea.vmem [#allocation8], %s1298_s16  ;;  %s1355_s17 = scalar_lea.hbm %s1408_s4, %s756_s25 }
 0x29d   : > { %s549_s30 = sshll.u32 %s346_s26, 4  ;;  %s530_s22 = scalar_lea.sflag [#allocation4], %s1295_s29  ;;  %s1357_s30 = int_to_ptr.vmem [resolvable:$true] %s549_s30 }
 0x29e   : > { %s975_s10 = scalar_lea.vmem %s1357_s30, 128  ;;  %s1073_s21 = smov [#allocation8]  }
 0x29f   : > { %p976_p8 = scmp.ne.s32.totalorder %s1357_s30, %s975_s10  ;;  %s979_s16 = sshll.u32 %s1073_s21, 4  ;;  %s980_s16 = int_to_ptr.vmem [resolvable:$false] %s979_s16 }
 0x2a0   : > { %s981_s25 = scalar_lea.vmem %s980_s16, 256  ;;  %p982_p12 = scmp.lt.s32.totalorder %s1357_s30, %s980_s16 }
 0x2a1   : > { %p977_p9 = pnand %p976_p8, %p1438_p7  ;;  %p983_p11 = scmp.lt.s32.totalorder %s981_s25, %s975_s10 }
 0x2a3   : > { %p978_p10 = pneg %p977_p9  ;;  %p984_p5 = por %p983_p11, %p982_p12 }
 0x2a5   : > { %p985_p4 = pnand %p984_p5, %p978_p10 }
 0x361   : > { %v523_v18 = vpop.f32.mrb[0].mxu1 }
 0x362   : > { %527 = vst.msk [vmem:[%s346_s26] sm:$0xff] %vm362_vm1, %v523_v18  ;;  %v773_v19 = vpop.f32.mrb[1].mxu1 }
 0x363   : > { %988 = shalt.err (!%p985_p4)
}
 0x364   : > { %s989_s29 = scalar_lea.hbm %s1355_s17, 128  ;;  %s993_s11 = scalar_lea.hbm %s1408_s4, 512 }
 0x365   : > { %p990_p6 = scmp.ne.s32.totalorder %s1355_s17, %s989_s29  ;;  %p994_p3 = scmp.lt.u32.totalorder %s1355_s17, %s1408_s4 }
 0x366   : > { %p995_p0 = scmp.lt.u32.totalorder %s993_s11, %s989_s29  ;;  %p997_p8 = scmp.lt.u32.totalorder %s989_s29, %s1355_s17 }
 0x367   : > { %p991_p2 = pnand %p990_p6, %p1438_p7 }
 0x368   : > { %p996_p1 = por %p995_p0, %p994_p3 }
 0x369   : > { %p992_p13 = pneg %p991_p2 }
 0x36a   : > { %p998_p9 = por %p997_p8, %p996_p1 }
 0x36c   : > { %p999_p10 = pnand %p998_p9, %p992_p13 }
 0x36e   : > { %1002 = shalt.err (!%p999_p10)
}
 0x36f   : > { %780 = dma.vmem_to_hbm [thread:$0]  (%p1438_p7), %s1357_s30, 128, %s1355_s17, %s530_s22  }
 0x370 PF: > { %s1439_s18 = sld [smem:[#allocation15_spill]]  ;;  %s1440_s7 = sld [smem:[#allocation19_spill]] }
 0x371   : > { %p802_p12 = scmp.ge.s32.totalorder %s1065_s23, 2 }
 0x376   : > { %s575_s12 = sand.u32 1, %s1439_s18   ;;  %p1441_p11 = scmp.ne.s32.totalorder %s1440_s7, 0 }
 0x377   : > { %s576_s27 = scalar_lea.sflag [#allocation4], %s575_s12 }
 0x378   : > { %p795_p5 = pnand %p802_p12, %p1441_p11 }
 0x37a   : > { %1036 = dma.done.wait (!%p795_p5), %s576_s27, 128  }
 0x37b   : > { %1038 = vsyncadd (!%p795_p5), %s576_s27, 4294967168  ;;  %s585_s9 = scalar_lea.sflag [#allocation10], %s575_s12 }
 0x37c   : > { %1040 = dma.done.wait (!%p795_p5), %s585_s9, 128  }
 0x37d   : > { %1042 = vsyncadd (!%p795_p5), %s585_s9, 4294967168  ;;  %s28_s23 = sadd.s32 1, %s1065_s23   ;;  %s1442_s6 = sld [smem:[#allocation18_spill]] }
 0x37e   : > { %p25_p4 = scmp.ge.s32.totalorder %s28_s23, 6   ;;  %s1443_s21 = sld [smem:[#allocation16_spill]] }
 0x37f   : > { %s1444_s22 = sld [smem:[#allocation17_spill]]  ;;  %s1445_s18 = smov %s1049_s19 }
 0x380   : > { %s1446_s19 = smov %s1053_s20  ;;  %27 = sbr.rel (!%p25_p4) target bundleno = 12 (0xc), region = 125 }
 0x383   : > { %s1447_s20 = smov %s1442_s6 }
 0x387   :  { %590 = vsyncpa [#allocation3], 1 }
 0x388   :  { %592 = vsyncpa [#allocation3 + $0x1], 1 }
 0x389   :  { %593 = vsyncpa [#allocation6], 1 }
 0x38a   :  { %595 = vsyncpa [#allocation6 + $0x1], 1 }
 0x38b   :  { %596 = vsyncpa [#allocation4], 1 }
 0x38c   :  { %598 = vsyncpa [#allocation4 + $0x1], 1 }
 0x38d   :  { %599 = vsyncpa [#allocation10], 1 }
 0x38e   :  { %601 = vsyncpa [#allocation10 + $0x1], 1 }

</bundles_post_ra>
